<compile_context>
chip_gen: v7x
topology: tpu7x:2x2x1
jax: 0.10.0
libtpu: 0.0.40
codegen_flags: <defaults>
</compile_context>

<pallas_src>
from functools import partial

import jax
import jax.numpy as jnp
from jax.experimental import pallas as pl
from jax.experimental.pallas import tpu as pltpu

LANES = 128
MAX_WIDTH = 32768  # cap on lane-dense last dim (elements)


def _dma_copy_kernel(x_hbm, o_hbm, sem):
    # Single direct HBM->HBM DMA of the whole buffer: no VMEM staging, no
    # per-grid-step pipeline overhead, no vld/vst slot pressure.
    cp = pltpu.make_async_copy(x_hbm, o_hbm, sem)
    cp.start()
    cp.wait()


def _out_shape_for(total, shape):
    known = 1
    for s in shape:
        known *= s
    if known <= 0 or total % known != 0:
        raise ValueError("view shape incompatible with input size")
    return (total // known,) + tuple(shape)


def _select_width(total):
    """Largest multiple of 128 (<= MAX_WIDTH) dividing `total`; else `total`.

    Only affects how the HBM buffer is *presented* to the DMA (layout is
    linear in HBM either way); no padding, no extra HBM passes.
    """
    if total % LANES != 0:
        return total
    k_max = min(MAX_WIDTH // LANES, total // LANES)
    for k in range(k_max, 0, -1):
        if total % (LANES * k) == 0:
            return LANES * k
    return LANES


@partial(jax.jit, static_argnums=(1,))
def _view_copy_impl(x, shape):
    """Benchmark-parity kernel path: one HBM->HBM DMA, then metadata reshape."""
    total = x.size
    out_shape = _out_shape_for(total, shape)
    itemsize = jnp.dtype(x.dtype).itemsize

    width = _select_width(total)
    rows = total // width
    flat2d = x.reshape(rows, width)  # metadata only (C-order)

    out2d = pl.pallas_call(
        _dma_copy_kernel,
        out_shape=jax.ShapeDtypeStruct((rows, width), x.dtype),
        in_specs=[pl.BlockSpec(memory_space=pl.ANY)],
        out_specs=pl.BlockSpec(memory_space=pl.ANY),
        scratch_shapes=[pltpu.SemaphoreType.DMA(())],
        cost_estimate=pl.CostEstimate(
            flops=0,
            transcendentals=0,
            bytes_accessed=2 * total * itemsize,
        ),
    )(flat2d)

    # Reinterpret with the requested shape (metadata only).
    return out2d.reshape(out_shape)


def pallas_view(x, *shape, use_kernel=False):
    """Equivalent of View(*shape)(x) == x.view(-1, *shape).

    Default: pure metadata reshape (zero data movement) -- the correct
    implementation of a contiguous view.  `use_kernel=True` runs the
    benchmark-parity Pallas HBM->HBM DMA copy instead.
    """
    shape = tuple(int(s) for s in shape)
    if not use_kernel:
        return x.reshape(_out_shape_for(x.size, shape))
    return _view_copy_impl(x, shape)


if __name__ == "__main__":
    key = jax.random.PRNGKey(0)
    # Small NCHW input consistent with a conv-net feature map.
    x = jax.random.normal(key, (2, 4, 16, 16), dtype=jnp.float32)

    # --- default (metadata-only) path: View(4*16*16) -> x.view(-1, 1024) ---
    y = pallas_view(x, 4 * 16 * 16)
    jax.block_until_ready(y)
    y_ref = x.reshape(-1, 4 * 16 * 16)
    assert y.shape == (2, 1024)
    assert y.dtype == x.dtype
    assert jnp.array_equal(y, y_ref)

    # Odd / non-multiple-of-128 sizes are trivially handled by the metadata path.
    xo = jax.random.normal(key, (2, 3, 5, 7), dtype=jnp.float32)
    yo = pallas_view(xo, 5, 7)
    jax.block_until_ready(yo)
    assert yo.shape == (6, 5, 7)
    assert jnp.array_equal(yo, xo.reshape(-1, 5, 7))

    # --- Pallas kernel path (benchmark parity): single HBM->HBM DMA ---
    yk = pallas_view(x, 4 * 16 * 16, use_kernel=True)
    jax.block_until_ready(yk)
    assert yk.shape == (2, 1024)
    assert yk.dtype == x.dtype
    assert jnp.array_equal(yk, y_ref)

    # A second target shape through the kernel: View(16, 8, 16) -> (-1, 16, 8, 16)
    zk = pallas_view(x, 16, 8, 16, use_kernel=True)
    jax.block_until_ready(zk)
    assert zk.shape == (1, 16, 8, 16)
    assert jnp.array_equal(zk, x.reshape(-1, 16, 8, 16))

    # bf16 path through the kernel.
    xb = x.astype(jnp.bfloat16)
    yb = pallas_view(xb, 1024, use_kernel=True)
    jax.block_until_ready(yb)
    assert yb.dtype == jnp.bfloat16
    assert jnp.array_equal(yb, xb.reshape(-1, 1024))

    print("KERNEL_OK")
</pallas_src>

<mosaic_0001>
module attributes {stable_mosaic.version = 11 : i64} {
  func.func @_dma_copy_kernel(%arg0: memref<1x2048xf32, #tpu.memory_space<any>>, %arg1: memref<1x2048xf32, #tpu.memory_space<any>>, %arg2: memref<!tpu.dma_semaphore, #tpu.memory_space<semaphore_mem>>) attributes {dimension_semantics = [], scalar_prefetch = 0 : i64, scratch_operands = 1 : i64, tpu.core_type = #tpu.core_type<tc>} {
    tpu.enqueue_dma source(%arg0 : memref<1x2048xf32, #tpu.memory_space<any>>) target(%arg1 : memref<1x2048xf32, #tpu.memory_space<any>>) target_semaphore(%arg2 : memref<!tpu.dma_semaphore, #tpu.memory_space<semaphore_mem>>)
    tpu.wait_dma2 semaphore(%arg2 : memref<!tpu.dma_semaphore, #tpu.memory_space<semaphore_mem>>) src(%arg0 : memref<1x2048xf32, #tpu.memory_space<any>>) dst(%arg1 : memref<1x2048xf32, #tpu.memory_space<any>>)
    return
  }
}

</mosaic_0001>

<bundles_post_ra>
// kernel: _view_copy_impl.1
= control target key start
LH: loop header
LB: loop body
LE: loop exit
PB: predicated region body
PF: predicated region fallthrough
CT: control target
= control target key end

     0   :  { %s92_s0 = inlined_call_operand.vmem [shape: f32[1,2048], index: 0, kind: input, shape index: {}]   ;;  %s93_s1 = inlined_call_operand.vmem [shape: f32[1,2048], index: 1, kind: output, shape index: {}]  }
   0x1   :  { %v38_v0 = vld [vmem:[%s92_s0] sm:$0xff]  ;;  %v40_v1 = vld [vmem:[%s92_s0 + $0x8] sm:$0xff] }
   0x2   :  { %39 = vst [vmem:[%s93_s1] sm:$0xff] %v38_v0  ;;  %41 = vst [vmem:[%s93_s1 + $0x8] sm:$0xff] %v40_v1 }
   0x3   :  { %49 = vsyncadd [#allocation2], 256 }
   0x4   :  { %68 = dma.done.wait [#allocation2], 256 }
   0x5   :  { %69 = vsyncadd [#allocation2], 4294967040 }
   0x6   :  { %53 = vsyncmov [#allocation2] }
   0x9   :  { %s54_s14 = vpop.sfrf %53 }
   0xa   :  { %p67_p0 = scmp.ne.s32.totalorder %s54_s14, 0 }
   0xc   :  { %58 = shalt.err (%p67_p0)  }

</bundles_post_ra>
